<compile_context>
chip_gen: v7x
topology: tpu7x:2x2x1
jax: 0.10.0
libtpu: 0.0.40
codegen_flags: <defaults>
</compile_context>

<pallas_src>
import jax
import jax.numpy as jnp
from jax import lax
from jax.experimental import pallas as pl
from jax.experimental.pallas import tpu as pltpu

B, S, D = 2, 8, 32          # batch, seq-len, input_size
H = 4                       # num_heads
HD = D // H                 # head_size
N = B * S                   # total rows across all batch elements


def mha_kernel(x_ref, w_ref, b_ref, o_ref):
    # One grid step = one batch element: (S, D) = (8, 32) rows.
    x = x_ref[...]                                                   # (S, D)

    # Fused QKV projection: (8,32) @ (32,96) on the MXU (3 matmuls -> 1).
    qkv = jnp.dot(x, w_ref[...],
                  preferred_element_type=jnp.float32) + b_ref[...]   # (S, 3D)
    q = qkv[:, :D]            # softmax scale already folded into W_q / b_q
    k = qkv[:, D:2 * D]
    v = qkv[:, 2 * D:]

    # Per-head attention via static lane slices.  All S keys in this step are
    # valid (same batch element), so no mask is needed.  H=4 fully unrolled.
    for h in range(H):
        sl = slice(h * HD, (h + 1) * HD)
        qh, kh, vh = q[:, sl], k[:, sl], v[:, sl]                    # (S, HD)
        scores = lax.dot_general(                                     # q @ k.T
            qh, kh, (((1,), (1,)), ((), ())),
            preferred_element_type=jnp.float32)                       # (S, S)
        m = jnp.max(scores, axis=-1, keepdims=True)
        e = jnp.exp(scores - m)
        denom = jnp.sum(e, axis=-1, keepdims=True)
        # EUP approximate reciprocal (free slot next to exp) + one Newton step
        # so the result stays inside the tight f32 tolerance.
        r = pl.reciprocal(denom, approx=True)
        r = r * (2.0 - denom * r)
        # Fold 1/denominator into the small (S, HD) epilogue and store this
        # head's output slice directly (no concat / reshape relayout).
        o_ref[:, sl] = (jnp.dot(e, vh, preferred_element_type=jnp.float32)
                        * r).astype(o_ref.dtype)


def multi_head_attention(x, w_qkv, b_qkv):
    """x: (B, S, D); w_qkv: (D, 3D) fused, pre-transposed QKV weight with the
    1/sqrt(head_size) scale folded into the Q columns; b_qkv: (1, 3D)."""
    x_flat = x.reshape(N, D)
    out_flat = pl.pallas_call(
        mha_kernel,
        out_shape=jax.ShapeDtypeStruct((N, D), x.dtype),
        grid_spec=pl.GridSpec(
            grid=(B,),                      # one step per batch element
            in_specs=[
                pl.BlockSpec((S, D), lambda b: (b, 0)),        # x rows of batch b
                pl.BlockSpec((D, 3 * D), lambda b: (0, 0)),    # fused W_qkv^T
                pl.BlockSpec((1, 3 * D), lambda b: (0, 0)),    # fused bias
            ],
            out_specs=pl.BlockSpec((S, D), lambda b: (b, 0)),
        ),
        compiler_params=pltpu.CompilerParams(
            dimension_semantics=("parallel",)),   # uses both TCs on v7x
    )(x_flat, w_qkv, b_qkv)
    # Free metadata reshape on a contiguous row-major array.
    return out_flat.reshape(B, S, D)


def reference(x, Wq, Wk, Wv, bq, bk, bv):
    q = (x @ Wq.T + bq).reshape(B, S, H, HD).transpose(0, 2, 1, 3)
    k = (x @ Wk.T + bk).reshape(B, S, H, HD).transpose(0, 2, 1, 3)
    v = (x @ Wv.T + bv).reshape(B, S, H, HD).transpose(0, 2, 1, 3)
    scores = jnp.einsum('bhqd,bhkd->bhqk', q, k) / jnp.sqrt(jnp.float32(HD))
    attn = jax.nn.softmax(scores, axis=-1)
    out = jnp.einsum('bhqk,bhkd->bhqd', attn, v)
    return out.transpose(0, 2, 1, 3).reshape(B, S, D)


if __name__ == "__main__":
    key = jax.random.PRNGKey(0)
    kx, kq, kk, kv, kbq, kbk, kbv = jax.random.split(key, 7)

    x = jax.random.normal(kx, (B, S, D), dtype=jnp.float32)

    # nn.Linear-style init (uniform in [-1/sqrt(D), 1/sqrt(D)]), deterministic.
    bound = 1.0 / jnp.sqrt(jnp.float32(D))
    Wq = jax.random.uniform(kq, (D, D), jnp.float32, -bound, bound)   # (out, in)
    Wk = jax.random.uniform(kk, (D, D), jnp.float32, -bound, bound)
    Wv = jax.random.uniform(kv, (D, D), jnp.float32, -bound, bound)
    bq = jax.random.uniform(kbq, (1, D), jnp.float32, -bound, bound)
    bk = jax.random.uniform(kbk, (1, D), jnp.float32, -bound, bound)
    bv = jax.random.uniform(kbv, (1, D), jnp.float32, -bound, bound)

    # One-time parameter transform (not a per-call wrapper op):
    #  * transpose to (D_in, D_out) so the kernel computes x @ W.T + b,
    #  * fold the 1/sqrt(head_size) softmax scale into the Q projection,
    #  * fuse Q/K/V into a single weight/bias for one projection matmul.
    scale = 1.0 / jnp.sqrt(jnp.float32(HD))
    w_qkv = jnp.concatenate([Wq.T * scale, Wk.T, Wv.T], axis=1)   # (D, 3D)
    b_qkv = jnp.concatenate([bq * scale, bk, bv], axis=1)         # (1, 3D)

    out = multi_head_attention(x, w_qkv, b_qkv)
    out = jax.block_until_ready(out)

    ref = reference(x, Wq, Wk, Wv, bq, bk, bv)
    assert out.shape == (B, S, D)
    assert jnp.allclose(out, ref, atol=2e-4, rtol=2e-4), "mismatch vs reference"

    print("KERNEL_OK")
</pallas_src>

<mosaic_0001>
module attributes {stable_mosaic.version = 11 : i64} {
  func.func @mha_kernel(%arg0: i32, %arg1: memref<8x32xf32, #tpu.memory_space<vmem>>, %arg2: memref<32x96xf32, #tpu.memory_space<vmem>>, %arg3: memref<1x96xf32, #tpu.memory_space<vmem>>, %arg4: memref<8x32xf32, #tpu.memory_space<vmem>>) attributes {dimension_semantics = [#tpu.dimension_semantics<parallel>], iteration_bounds = array<i64: 2>, scalar_prefetch = 0 : i64, scratch_operands = 0 : i64, tpu.core_type = #tpu.core_type<tc>, window_params = [{transform_indices = @transform_0, window_bounds = array<i64: 8, 32>}, {pipeline_mode = #tpu.pipeline_mode<synchronous>, transform_indices = @transform_1, window_bounds = array<i64: 32, 96>}, {pipeline_mode = #tpu.pipeline_mode<synchronous>, transform_indices = @transform_2, window_bounds = array<i64: 1, 96>}, {transform_indices = @transform_3, window_bounds = array<i64: 8, 32>}]} {
    %c0 = arith.constant 0 : index
    %c0_0 = arith.constant 0 : index
    %0 = vector.load %arg1[%c0, %c0_0] : memref<8x32xf32, #tpu.memory_space<vmem>>, vector<8x32xf32>
    %c0_1 = arith.constant 0 : index
    %c0_2 = arith.constant 0 : index
    %1 = vector.load %arg2[%c0_1, %c0_2] : memref<32x96xf32, #tpu.memory_space<vmem>>, vector<32x96xf32>
    %cst = arith.constant dense<0.000000e+00> : vector<8x96xf32>
    %2 = tpu.matmul %0, %1, %cst {dimension_numbers = #tpu.dot_dimension_numbers<[1], [0], [0], [1], [0, 0, 1, 1], [], []>} : vector<8x32xf32>, vector<32x96xf32>, vector<8x96xf32> -> vector<8x96xf32>
    %c0_3 = arith.constant 0 : index
    %c0_4 = arith.constant 0 : index
    %3 = vector.load %arg3[%c0_3, %c0_4] : memref<1x96xf32, #tpu.memory_space<vmem>>, vector<1x96xf32>
    %4 = vector.broadcast %3 : vector<1x96xf32> to vector<8x96xf32>
    %5 = arith.addf %2, %4 : vector<8x96xf32>
    %6 = vector.extract_strided_slice %5 {offsets = [0, 0], sizes = [8, 32], strides = [1, 1]} : vector<8x96xf32> to vector<8x32xf32>
    %7 = vector.extract_strided_slice %5 {offsets = [0, 32], sizes = [8, 32], strides = [1, 1]} : vector<8x96xf32> to vector<8x32xf32>
    %8 = vector.extract_strided_slice %5 {offsets = [0, 64], sizes = [8, 32], strides = [1, 1]} : vector<8x96xf32> to vector<8x32xf32>
    %9 = vector.extract_strided_slice %6 {offsets = [0, 0], sizes = [8, 8], strides = [1, 1]} : vector<8x32xf32> to vector<8x8xf32>
    %10 = vector.extract_strided_slice %7 {offsets = [0, 0], sizes = [8, 8], strides = [1, 1]} : vector<8x32xf32> to vector<8x8xf32>
    %11 = vector.extract_strided_slice %8 {offsets = [0, 0], sizes = [8, 8], strides = [1, 1]} : vector<8x32xf32> to vector<8x8xf32>
    %cst_5 = arith.constant dense<0.000000e+00> : vector<8x8xf32>
    %12 = tpu.matmul %9, %10, %cst_5 {dimension_numbers = #tpu.dot_dimension_numbers<[1], [1], [0], [0], [0, 0, 1, 0], [], []>} : vector<8x8xf32>, vector<8x8xf32>, vector<8x8xf32> -> vector<8x8xf32>
    %cst_6 = arith.constant dense<0xFF800000> : vector<8xf32>
    %13 = vector.multi_reduction <maximumf>, %12, %cst_6 [1] : vector<8x8xf32> to vector<8xf32>
    %14 = vector.shape_cast %13 : vector<8xf32> to vector<8x1xf32>
    %15 = vector.broadcast %14 : vector<8x1xf32> to vector<8x8xf32>
    %16 = arith.subf %12, %15 : vector<8x8xf32>
    %17 = math.exp %16 : vector<8x8xf32>
    %cst_7 = arith.constant dense<0.000000e+00> : vector<8xf32>
    %18 = vector.multi_reduction <add>, %17, %cst_7 [1] : vector<8x8xf32> to vector<8xf32>
    %19 = vector.shape_cast %18 : vector<8xf32> to vector<8x1xf32>
    %20 = tpu.reciprocal %19 {approx = true} : vector<8x1xf32> -> vector<8x1xf32>
    %21 = arith.mulf %19, %20 : vector<8x1xf32>
    %cst_8 = arith.constant 2.000000e+00 : f32
    %22 = vector.broadcast %cst_8 : f32 to vector<8x1xf32>
    %23 = arith.subf %22, %21 : vector<8x1xf32>
    %24 = arith.mulf %20, %23 : vector<8x1xf32>
    %cst_9 = arith.constant dense<0.000000e+00> : vector<8x8xf32>
    %25 = tpu.matmul %17, %11, %cst_9 {dimension_numbers = #tpu.dot_dimension_numbers<[1], [0], [0], [1], [0, 0, 1, 1], [], []>} : vector<8x8xf32>, vector<8x8xf32>, vector<8x8xf32> -> vector<8x8xf32>
    %26 = vector.broadcast %24 : vector<8x1xf32> to vector<8x8xf32>
    %27 = arith.mulf %25, %26 : vector<8x8xf32>
    %c0_10 = arith.constant 0 : index
    %c0_11 = arith.constant 0 : index
    %28 = vector.load %arg4[%c0_10, %c0_11] : memref<8x32xf32, #tpu.memory_space<vmem>>, vector<8x8xf32>
    tpu.vector_store %arg4[%c0_10, %c0_11], %27 {strides = array<i32>} : memref<8x32xf32, #tpu.memory_space<vmem>>, vector<8x8xf32>,
    %29 = vector.extract_strided_slice %6 {offsets = [0, 8], sizes = [8, 8], strides = [1, 1]} : vector<8x32xf32> to vector<8x8xf32>
    %30 = vector.extract_strided_slice %7 {offsets = [0, 8], sizes = [8, 8], strides = [1, 1]} : vector<8x32xf32> to vector<8x8xf32>
    %31 = vector.extract_strided_slice %8 {offsets = [0, 8], sizes = [8, 8], strides = [1, 1]} : vector<8x32xf32> to vector<8x8xf32>
    %cst_12 = arith.constant dense<0.000000e+00> : vector<8x8xf32>
    %32 = tpu.matmul %29, %30, %cst_12 {dimension_numbers = #tpu.dot_dimension_numbers<[1], [1], [0], [0], [0, 0, 1, 0], [], []>} : vector<8x8xf32>, vector<8x8xf32>, vector<8x8xf32> -> vector<8x8xf32>
    %cst_13 = arith.constant dense<0xFF800000> : vector<8xf32>
    %33 = vector.multi_reduction <maximumf>, %32, %cst_13 [1] : vector<8x8xf32> to vector<8xf32>
    %34 = vector.shape_cast %33 : vector<8xf32> to vector<8x1xf32>
    %35 = vector.broadcast %34 : vector<8x1xf32> to vector<8x8xf32>
    %36 = arith.subf %32, %35 : vector<8x8xf32>
    %37 = math.exp %36 : vector<8x8xf32>
    %cst_14 = arith.constant dense<0.000000e+00> : vector<8xf32>
    %38 = vector.multi_reduction <add>, %37, %cst_14 [1] : vector<8x8xf32> to vector<8xf32>
    %39 = vector.shape_cast %38 : vector<8xf32> to vector<8x1xf32>
    %40 = tpu.reciprocal %39 {approx = true} : vector<8x1xf32> -> vector<8x1xf32>
    %41 = arith.mulf %39, %40 : vector<8x1xf32>
    %cst_15 = arith.constant 2.000000e+00 : f32
    %42 = vector.broadcast %cst_15 : f32 to vector<8x1xf32>
    %43 = arith.subf %42, %41 : vector<8x1xf32>
    %44 = arith.mulf %40, %43 : vector<8x1xf32>
    %cst_16 = arith.constant dense<0.000000e+00> : vector<8x8xf32>
    %45 = tpu.matmul %37, %31, %cst_16 {dimension_numbers = #tpu.dot_dimension_numbers<[1], [0], [0], [1], [0, 0, 1, 1], [], []>} : vector<8x8xf32>, vector<8x8xf32>, vector<8x8xf32> -> vector<8x8xf32>
    %46 = vector.broadcast %44 : vector<8x1xf32> to vector<8x8xf32>
    %47 = arith.mulf %45, %46 : vector<8x8xf32>
    %c0_17 = arith.constant 0 : index
    %c8 = arith.constant 8 : index
    %48 = vector.load %arg4[%c0_17, %c8] : memref<8x32xf32, #tpu.memory_space<vmem>>, vector<8x8xf32>
    tpu.vector_store %arg4[%c0_17, %c8], %47 {strides = array<i32>} : memref<8x32xf32, #tpu.memory_space<vmem>>, vector<8x8xf32>,
    %49 = vector.extract_strided_slice %6 {offsets = [0, 16], sizes = [8, 8], strides = [1, 1]} : vector<8x32xf32> to vector<8x8xf32>
    %50 = vector.extract_strided_slice %7 {offsets = [0, 16], sizes = [8, 8], strides = [1, 1]} : vector<8x32xf32> to vector<8x8xf32>
    %51 = vector.extract_strided_slice %8 {offsets = [0, 16], sizes = [8, 8], strides = [1, 1]} : vector<8x32xf32> to vector<8x8xf32>
    %cst_18 = arith.constant dense<0.000000e+00> : vector<8x8xf32>
    %52 = tpu.matmul %49, %50, %cst_18 {dimension_numbers = #tpu.dot_dimension_numbers<[1], [1], [0], [0], [0, 0, 1, 0], [], []>} : vector<8x8xf32>, vector<8x8xf32>, vector<8x8xf32> -> vector<8x8xf32>
    %cst_19 = arith.constant dense<0xFF800000> : vector<8xf32>
    %53 = vector.multi_reduction <maximumf>, %52, %cst_19 [1] : vector<8x8xf32> to vector<8xf32>
    %54 = vector.shape_cast %53 : vector<8xf32> to vector<8x1xf32>
    %55 = vector.broadcast %54 : vector<8x1xf32> to vector<8x8xf32>
    %56 = arith.subf %52, %55 : vector<8x8xf32>
    %57 = math.exp %56 : vector<8x8xf32>
    %cst_20 = arith.constant dense<0.000000e+00> : vector<8xf32>
    %58 = vector.multi_reduction <add>, %57, %cst_20 [1] : vector<8x8xf32> to vector<8xf32>
    %59 = vector.shape_cast %58 : vector<8xf32> to vector<8x1xf32>
    %60 = tpu.reciprocal %59 {approx = true} : vector<8x1xf32> -> vector<8x1xf32>
    %61 = arith.mulf %59, %60 : vector<8x1xf32>
    %cst_21 = arith.constant 2.000000e+00 : f32
    %62 = vector.broadcast %cst_21 : f32 to vector<8x1xf32>
    %63 = arith.subf %62, %61 : vector<8x1xf32>
    %64 = arith.mulf %60, %63 : vector<8x1xf32>
    %cst_22 = arith.constant dense<0.000000e+00> : vector<8x8xf32>
    %65 = tpu.matmul %57, %51, %cst_22 {dimension_numbers = #tpu.dot_dimension_numbers<[1], [0], [0], [1], [0, 0, 1, 1], [], []>} : vector<8x8xf32>, vector<8x8xf32>, vector<8x8xf32> -> vector<8x8xf32>
    %66 = vector.broadcast %64 : vector<8x1xf32> to vector<8x8xf32>
    %67 = arith.mulf %65, %66 : vector<8x8xf32>
    %c0_23 = arith.constant 0 : index
    %c16 = arith.constant 16 : index
    %68 = vector.load %arg4[%c0_23, %c16] : memref<8x32xf32, #tpu.memory_space<vmem>>, vector<8x8xf32>
    tpu.vector_store %arg4[%c0_23, %c16], %67 {strides = array<i32>} : memref<8x32xf32, #tpu.memory_space<vmem>>, vector<8x8xf32>,
    %69 = vector.extract_strided_slice %6 {offsets = [0, 24], sizes = [8, 8], strides = [1, 1]} : vector<8x32xf32> to vector<8x8xf32>
    %70 = vector.extract_strided_slice %7 {offsets = [0, 24], sizes = [8, 8], strides = [1, 1]} : vector<8x32xf32> to vector<8x8xf32>
    %71 = vector.extract_strided_slice %8 {offsets = [0, 24], sizes = [8, 8], strides = [1, 1]} : vector<8x32xf32> to vector<8x8xf32>
    %cst_24 = arith.constant dense<0.000000e+00> : vector<8x8xf32>
    %72 = tpu.matmul %69, %70, %cst_24 {dimension_numbers = #tpu.dot_dimension_numbers<[1], [1], [0], [0], [0, 0, 1, 0], [], []>} : vector<8x8xf32>, vector<8x8xf32>, vector<8x8xf32> -> vector<8x8xf32>
    %cst_25 = arith.constant dense<0xFF800000> : vector<8xf32>
    %73 = vector.multi_reduction <maximumf>, %72, %cst_25 [1] : vector<8x8xf32> to vector<8xf32>
    %74 = vector.shape_cast %73 : vector<8xf32> to vector<8x1xf32>
    %75 = vector.broadcast %74 : vector<8x1xf32> to vector<8x8xf32>
    %76 = arith.subf %72, %75 : vector<8x8xf32>
    %77 = math.exp %76 : vector<8x8xf32>
    %cst_26 = arith.constant dense<0.000000e+00> : vector<8xf32>
    %78 = vector.multi_reduction <add>, %77, %cst_26 [1] : vector<8x8xf32> to vector<8xf32>
    %79 = vector.shape_cast %78 : vector<8xf32> to vector<8x1xf32>
    %80 = tpu.reciprocal %79 {approx = true} : vector<8x1xf32> -> vector<8x1xf32>
    %81 = arith.mulf %79, %80 : vector<8x1xf32>
    %cst_27 = arith.constant 2.000000e+00 : f32
    %82 = vector.broadcast %cst_27 : f32 to vector<8x1xf32>
    %83 = arith.subf %82, %81 : vector<8x1xf32>
    %84 = arith.mulf %80, %83 : vector<8x1xf32>
    %cst_28 = arith.constant dense<0.000000e+00> : vector<8x8xf32>
    %85 = tpu.matmul %77, %71, %cst_28 {dimension_numbers = #tpu.dot_dimension_numbers<[1], [0], [0], [1], [0, 0, 1, 1], [], []>} : vector<8x8xf32>, vector<8x8xf32>, vector<8x8xf32> -> vector<8x8xf32>
    %86 = vector.broadcast %84 : vector<8x1xf32> to vector<8x8xf32>
    %87 = arith.mulf %85, %86 : vector<8x8xf32>
    %c0_29 = arith.constant 0 : index
    %c24 = arith.constant 24 : index
    %88 = vector.load %arg4[%c0_29, %c24] : memref<8x32xf32, #tpu.memory_space<vmem>>, vector<8x8xf32>
    tpu.vector_store %arg4[%c0_29, %c24], %87 {strides = array<i32>} : memref<8x32xf32, #tpu.memory_space<vmem>>, vector<8x8xf32>,
    return
  }
  func.func @transform_0(%arg0: i32) -> (i32, i32) {
    %c0_i32 = arith.constant 0 : i32
    %c0_i32_0 = arith.constant 0 : i32
    return %arg0, %c0_i32 : i32, i32
  }
  func.func @transform_1(%arg0: i32) -> (i32, i32) {
    %c0_i32 = arith.constant 0 : i32
    %c0_i32_0 = arith.constant 0 : i32
    %c0_i32_1 = arith.constant 0 : i32
    return %c0_i32, %c0_i32_0 : i32, i32
  }
  func.func @transform_2(%arg0: i32) -> (i32, i32) {
    %c0_i32 = arith.constant 0 : i32
    %c0_i32_0 = arith.constant 0 : i32
    %c0_i32_1 = arith.constant 0 : i32
    return %c0_i32, %c0_i32_0 : i32, i32
  }
  func.func @transform_3(%arg0: i32) -> (i32, i32) {
    %c0_i32 = arith.constant 0 : i32
    %c0_i32_0 = arith.constant 0 : i32
    return %arg0, %c0_i32 : i32, i32
  }
}

</mosaic_0001>

<bundles_post_ra>
// kernel: tpu_custom_call.1
= control target key start
LH: loop header
LB: loop body
LE: loop exit
PB: predicated region body
PF: predicated region fallthrough
CT: control target
= control target key end

     0   :  { %8 = vsyncpa [#allocation3], 0  ;;  %s1699_s0 = inlined_call_operand.hbm [shape: f32[16,32], index: 0, kind: input, shape index: {}]   ;;  %s1700_s1 = inlined_call_operand.hbm [shape: f32[32,96], index: 1, kind: input, shape index: {}]   ;;  %s1701_s2 = inlined_call_operand.vmem [shape: f32[1,96], index: 2, kind: input, shape index: {}]   ;;  %s1702_s3 = inlined_call_operand.hbm [shape: f32[16,32], index: 3, kind: output, shape index: {}]  }
   0x1   :  { %10 = vsyncpa [#allocation3 + $0x1], 0 }
   0x2   :  { %11 = vsyncpa [#allocation6], 0 }
   0x3   :  { %12 = vsyncpa [#allocation4], 0 }
   0x4   :  { %14 = vsyncpa [#allocation4 + $0x1], 0  ;;  %s1442_s12 = smov 0   ;;  %s1444_s13 = smov 0  }
   0x5   :  { %s1446_s14 = smov 0   ;;  %s1448_s15 = smov 0  }
   0x6 LB: > { %s1463_s16 = sadd.s32 4294967295, %s1398_s15   ;;  %s1072_s17 = sadd.s32 4294967294, %s1398_s15   ;;  %s1398_s15 = sphi %s1448_s15, %s1722_s15   ;;  %s1394_s14 = sphi %s1446_s14, %s1721_s14   ;;  %s1390_s13 = sphi %s1444_s13, %s1720_s13   ;;  %s1386_s12 = sphi %s1442_s12, %s1719_s12  }
   0x7   : > { %p40_p0 = scmp.ne.s32.totalorder %s1390_s13, %s1386_s12  ;;  %p1703_p1 = scmp.eq.s32.totalorder %s1463_s16, 0 }
   0x8   : > { %p112_p3 = scmp.eq.s32.totalorder %s1072_s17, 1  ;;  %p1073_p5 = scmp.ge.s32.totalorder %s1398_s15, 1 }
   0x9   : > { %p1472_p4 = por %p1703_p1, %p40_p0  ;;  %p119_p7 = scmp.lt.s32.totalorder %s1398_s15, 3 }
   0xa   : > { %p1477_p6 = por %p112_p3, %p40_p0  ;;  %s1400_s21 = smov [#allocation5]  }
   0xb   : > { %s1706_s18 = scalar_select %p1472_p4, 1, 0 }
   0xc   : > { %s1707_s19 = scalar_select %p1477_p6, 1, 0 }
   0xd   : > { %p1482_p8 = pnand %p1073_p5, %p119_p7  ;;  %s131_s22 = sshll.u32 %s1400_s21, 4  ;;  %s1486_s22 = int_to_ptr.vmem [resolvable:$true] %s131_s22 }
   0xe   : > { %s1498_s24 = sadd.s32 1, %s1398_s15   ;;  %s27_s25 = sadd.s32 1, %s1394_s14 }
   0xf   : > { %s1708_s20 = scalar_select %p1482_p8, 1, 0 }
  0x10   : > { %p1186_p9 = pneg %p1482_p8  ;;  %s24_s26 = ssub.s32 %s1398_s15, %s1498_s24 }
  0x11   : > { %s1270_s29 = scalar_lea.hbm %s1700_s1, 512 }
  0x12   : > { %p1493_p11 = pnand %p1186_p9, %p1703_p1  ;;  %p1271_p12 = scmp.ne.s32.totalorder %s1700_s1, %s1270_s29 }
  0x13   : > { %p1277_p5 = scmp.lt.u32.totalorder %s1270_s29, %s1700_s1 }
  0x14   : > { %p1272_p13 = pneg %p1493_p11 }
  0x16   : > { %p1273_p0 = pnand %p1272_p13, %p1271_p12 }
  0x18   : > { %p1274_p3 = pneg %p1273_p0 }
  0x1a   : > { %p1279_p7 = pnand %p1277_p5, %p1274_p3 }
  0x1c   : > { %1282 = shalt.err (!%p1279_p7)
}
  0x1d   : > { %s1283_s7 = scalar_lea.vmem %s1486_s22, 512  ;;  %p1291_p2 = scmp.lt.s32.totalorder %s1486_s22, %s1486_s22 }
  0x1e   : > { %p1284_p9 = scmp.ne.s32.totalorder %s1486_s22, %s1283_s7  ;;  %p1292_p6 = scmp.lt.s32.totalorder %s1283_s7, %s1283_s7 }
  0x20   : > { %p1286_p10 = pnand %p1284_p9, %p1272_p13  ;;  %p1293_p4 = por %p1292_p6, %p1291_p2 }
  0x22   : > { %p1287_p1 = pneg %p1286_p10 }
  0x24   : > { %p1294_p8 = pnand %p1293_p4, %p1287_p1 }
  0x26   : > { %1297 = shalt.err (!%p1294_p8)
}
  0x27   : > { %s1401_s8 = smov 128   ;;  %s1402_s9 = smov 8  }
  0x28   : > { %1189 = dma.hbm_to_vmem [thread:$0]  (!%p1493_p11), %s1700_s1, 512, %s1486_s22, [#allocation6], %s1401_s8, %s1401_s8, %s1402_s9  }
  0x29   : > { %p25_p2 = scmp.eq.s32.totalorder %s24_s26, 0  ;;  %p34_p1 = scmp.ne.s32.totalorder %s1394_s14, %s1390_s13 }
  0x2a   : > { %p35_p4 = scmp.eq.s32.totalorder %s1398_s15, 0  ;;  %p1199_p6 = scmp.lt.s32.totalorder %s1398_s15, 2 }
  0x2b   : > { %s1529_s17 = scalar_select %p25_p2, %s1394_s14, %s27_s25  }
  0x2c   : > { %p36_p8 = por %p35_p4, %p34_p1  ;;  %p1710_p10 = scmp.eq.s32.totalorder %s1463_s16, 1 }
  0x2d   : > { %s148_s27 = sand.u32 1, %s1394_s14   ;;  %s1077_s28 = sshll.u32 %s1398_s15, 7 }
  0x2e   : > { %p1533_p12 = por %p1710_p10, %p34_p1  ;;  %s1076_s29 = sshll.u32 %s148_s27, 3 }
  0x2f   : > { %s1542_s4 = scalar_lea.hbm %s1699_s0, %s1077_s28  ;;  %s152_s22 = scalar_lea.vmem [#allocation2], %s1076_s29 }
  0x30   : > { %s159_s25 = sshll.u32 %s152_s22, 4  ;;  %p1544_p11 = pnand %p1199_p6, %p36_p8  ;;  %s1548_s25 = int_to_ptr.vmem [resolvable:$true] %s159_s25 }
  0x31   : > { %s149_s5 = scalar_lea.sflag [#allocation3], %s148_s27  ;;  %s1298_s6 = scalar_lea.hbm %s1542_s4, 128 }
  0x32   : > { %p1299_p13 = scmp.ne.s32.totalorder %s1542_s4, %s1298_s6  ;;  %p1300_p0 = pneg %p1544_p11 }
  0x33   : > { %s1303_s9 = scalar_lea.hbm %s1699_s0, 256  ;;  %p1304_p7 = scmp.lt.u32.totalorder %s1542_s4, %s1699_s0 }
  0x34   : > { %p1301_p3 = pnand %p1300_p0, %p1299_p13  ;;  %p1305_p9 = scmp.lt.u32.totalorder %s1303_s9, %s1298_s6 }
  0x35   : > { %p1307_p1 = scmp.lt.u32.totalorder %s1298_s6, %s1542_s4 }
  0x36   : > { %p1302_p5 = pneg %p1301_p3  ;;  %p1306_p2 = por %p1305_p9, %p1304_p7 }
  0x38   : > { %p1308_p4 = por %p1307_p1, %p1306_p2 }
  0x3a   : > { %p1309_p6 = pnand %p1308_p4, %p1302_p5 }
  0x3c   : > { %1312 = shalt.err (!%p1309_p6)
}
  0x3d   : > { %s1313_s27 = scalar_lea.vmem %s1548_s25, 128  ;;  %s1403_s28 = smov [#allocation2]  }
  0x3e   : > { %p1314_p8 = scmp.ne.s32.totalorder %s1548_s25, %s1313_s27  ;;  %s1318_s29 = sshll.u32 %s1403_s28, 4  ;;  %s1319_s29 = int_to_ptr.vmem [resolvable:$false] %s1318_s29 }
  0x3f   : > { %s1320_s23 = scalar_lea.vmem %s1319_s29, 256  ;;  %p1321_p3 = scmp.lt.s32.totalorder %s1548_s25, %s1319_s29 }
  0x40   : > { %p1316_p10 = pnand %p1314_p8, %p1300_p0  ;;  %p1322_p7 = scmp.lt.s32.totalorder %s1320_s23, %s1313_s27 }
  0x42   : > { %p1317_p13 = pneg %p1316_p10  ;;  %p1323_p9 = por %p1322_p7, %p1321_p3 }
  0x44   : > { %p1324_p2 = pnand %p1323_p9, %p1317_p13 }
  0x46   : > { %1327 = shalt.err (!%p1324_p2)
}
  0x47   : > { %1193 = dma.hbm_to_vmem [thread:$0]  (!%p1544_p11), %s1542_s4, 128, %s1548_s25, %s149_s5  }
  0x48   : > { %p1713_p5 = scmp.ne.s32.totalorder %s1708_s20, 0 }
  0x49   : > { %s1578_s30 = sand.u32 (!%p1713_p5), 1, %s1390_s13   ;;  %p1714_p0 = scmp.ne.s32.totalorder (!%p1713_p5), %s1706_s18, 0 }
  0x4a   : > { %168 = sbr.rel (%p1713_p5) target bundleno = 1193 (0x4a9), region = 32  ;;  %s1079_s22 = sshll.u32 (!%p1713_p5), %s1578_s30, 3 }
  0x4b   : > { %s171_s6 = scalar_lea.sflag (!%p1713_p5), [#allocation3], %s1578_s30  ;;  %s174_s7 = scalar_lea.vmem (!%p1713_p5), [#allocation2], %s1079_s22 }
  0x51   : > { %1373 = dma.done.wait (%p1714_p0), %s171_s6, 128  }
  0x52   : > { %1375 = vsyncadd (%p1714_p0), %s171_s6, 4294967168  ;;  %p1715_p11 = scmp.eq.s32.totalorder %s1463_s16, 0 }
  0x54   : > { %1377 = dma.done.wait (%p1715_p11), [#allocation6], 512   ;;  %p1716_p1 = pmov %p1715_p11 }
  0x55   : > { %v1404_v0 = vmov 0.0|0.0   ;;  %vm1405_vm0 = vmmov 0   ;;  %v1406_v1 = vmov 0.0   ;;  %v202_v2 = vld [vmem:[#allocation5] sm:$0xff]  ;;  %v203_v3 = vld [vmem:[#allocation5 + $0x8] sm:$0xff]  ;;  %v204_v4 = vld [vmem:[#allocation5 + $0x10] sm:$0xff] }
  0x56   : > { %1379 = vsyncadd (%p1716_p1), [#allocation6], 4294966784  ;;  %1172 = vmatprep.subr.bf16.mxu0 %v1404_v0  ;;  %1129 = vmatprep.mubr.msk.f32.mxu0 %vm1405_vm0, %v1406_v1  ;;  %v1173_v5 = vpack.c.bf16 %v203_v3, %v202_v2  ;;  %v205_v6 = vld [vmem:[#allocation5 + $0x18] sm:$0xff]  ;;  %vm213_vm1 = vcmask 261120   ;;  %v1082_v9 = vld [vmem:[%s1701_s2] ss:$0 sm:$0xff] }
  0x57   : > { %1132 = vmatprep.subr.mxu1 %v1406_v1  ;;  %1134 = vmatprep.mubr.msk.f32.mxu1 %vm1405_vm0, %v1406_v1  ;;  %v1176_v7 = vpack.c.bf16 %v205_v6, %v204_v4  ;;  %v201_v8 = vld [vmem:[%s174_s7] sm:$0xff]  ;;  %s1407_s4 = smov 120   ;;  %s1408_s25 = smov 96   ;;  %vm290_vm2 = vcmask 64512   ;;  %vm628_vm3 = vcmask 130112   ;;  %vm802_vm4 = vcmask 195712  }
  0x58   : > { %1174 = vmatpush3.bf16.msra.mxu0 %v1173_v5  ;;  %s1409_s26 = smov 80   ;;  %s1410_s5 = smov 88   ;;  %vm976_vm5 = vcmask 261312  }
  0x59   : > { %1175 = vmatprep.subr.bf16.mxu0 %v1404_v0  ;;  %s1411_s8 = smov 72   ;;  %s1412_s9 = smov 112  }
  0x5a   : > { %s1413_s10 = smov 104   ;;  %s1414_s11 = smov 56  }
  0x5b   : > { %s1415_s27 = smov 64   ;;  %s1416_s28 = smov 40  }
  0x5c   : > { %1177 = vmatpush3.bf16.msra.mxu0 %v1176_v7  ;;  %s1417_s29 = smov 48   ;;  %s1643_s23 = scalar_lea.vmem [#allocation7], %s1079_s22 }
  0x5d   : > { %1142 = vmatprep.subr.mxu0 %v1406_v1  ;;  %s1418_s6 = smov 8   ;;  %s1419_s22 = smov 16  }
  0x5e   : > { %s1420_s7 = smov 24   ;;  %s1097_s18 = sshll.u32 %s1463_s16, 7 }
  0x5f   : > { %1130 = vmatmul.mubr.msk.f32.vlgmr.msra.gmra.mrb[0].mxu0 %vm213_vm1, %v201_v8  ;;  %s992_s20 = sshll.u32 %s1643_s23, 4  ;;  %s1421_s16 = smov [#allocation7]   ;;  %s1656_s20 = int_to_ptr.vmem [resolvable:$true] %s992_s20 }
  0x60   : > { %1144 = vmatprep.mubr.msk.f32.mxu0 %vm1405_vm0, %v1406_v1 }
 0x132   : > { %v283_v10 = vpop.f32.mrb[0].mxu0 }
 0x133   : > { %v284_v11 = vadd.f32 %v1082_v9, %v283_v10  ;;  %v1131_v12 = vpop.f32.mrb[1].mxu0 }
 0x135   : > { %456 = vrot.lane.b32.xlu1 %v284_v11, %s1407_s4  ;;  %288 = vrot.lane.b32.xlu0 %v284_v11, %s1408_s25 }
 0x139   : > { %632 = vrot.lane.b32.xlu1 %v284_v11, %s1409_s26  ;;  %458 = vrot.lane.b32.xlu0 %v284_v11, %s1410_s5  ;;  %s1654_s26 = scalar_lea.hbm %s1702_s3, %s1097_s18  ;;  %s979_s5 = scalar_lea.sflag [#allocation4], %s1578_s30 }
 0x13d   : > { %806 = vrot.lane.b32.xlu1 %v284_v11, %s1411_s8  ;;  %630 = vrot.lane.b32.xlu0 %v284_v11, %s1412_s9  ;;  %s1328_s8 = scalar_lea.vmem %s1656_s20, 128  ;;  %s1332_s9 = sshll.u32 %s1421_s16, 4  ;;  %s1333_s9 = int_to_ptr.vmem [resolvable:$false] %s1332_s9 }
 0x13e   : > { %p1329_p4 = scmp.ne.s32.totalorder %s1656_s20, %s1328_s8  ;;  %p1335_p10 = scmp.lt.s32.totalorder %s1656_s20, %s1333_s9 }
 0x140   : > { %p1330_p6 = pnand %p1329_p4, %p1533_p12 }
 0x141   : > { %804 = vrot.lane.b32.xlu0 %v284_v11, %s1413_s10  ;;  %s1334_s10 = scalar_lea.vmem %s1333_s9, 256 }
 0x142   : > { %p1331_p8 = pneg %p1330_p6  ;;  %p1336_p13 = scmp.lt.s32.totalorder %s1334_s10, %s1328_s8 }
 0x144   : > { %p1337_p3 = por %p1336_p13, %p1335_p10 }
 0x146   : > { %p1338_p7 = pnand %p1337_p3, %p1331_p8 }
 0x1a7   : > { %v457_v13 = vpop.permute.xlu1 %456  ;;  %v289_v14 = vpop.permute.xlu0 %288 }
 0x1a8   : > { %1133 = vmatpush3.xpose.msk.msra.mxu1 %vm290_vm2, %v289_v14 }
 0x1a9   : > { %1137 = vmatprep.subr.mxu1 %v1406_v1 }
 0x1ab   : > { %1135 = vmatmul.mubr.msk.f32.vlgmr.msra.gmra.mrb[0].mxu1 %vm290_vm2, %v284_v11  ;;  %v459_v15 = vpop.permute.xlu0 %458  ;;  %v633_v16 = vpop.permute.xlu1 %632 }
 0x1ac   : > { %1143 = vmatpush3.xpose.msk.msra.mxu0 %vm290_vm2, %v459_v15  ;;  %1139 = vmatprep.mubr.msk.f32.mxu1 %vm1405_vm0, %v1406_v1 }
 0x1ad   : > { %1152 = vmatprep.subr.mxu0 %v1406_v1 }
 0x1af   : > { %1145 = vmatmul.mubr.msk.f32.vlgmr.msra.gmra.mrb[2].mxu0 %vm290_vm2, %v457_v13  ;;  %v631_v17 = vpop.permute.xlu0 %630  ;;  %v807_v18 = vpop.permute.xlu1 %806 }
 0x1b0   : > { %1153 = vmatpush3.xpose.msk.msra.mxu0 %vm290_vm2, %v633_v16  ;;  %1154 = vmatprep.mubr.msk.f32.mxu0 %vm1405_vm0, %v1406_v1 }
 0x1b1   : > { %1162 = vmatprep.subr.mxu0 %v1406_v1 }
 0x1b3   : > { %1155 = vmatmul.mubr.msk.f32.vlgmr.msra.gmra.mrb[4].mxu0 %vm290_vm2, %v631_v17  ;;  %v805_v19 = vpop.permute.xlu0 %804 }
 0x1b4   : > { %1163 = vmatpush3.xpose.msk.msra.mxu0 %vm290_vm2, %v807_v18  ;;  %1164 = vmatprep.mubr.msk.f32.mxu0 %vm1405_vm0, %v1406_v1 }
 0x1b7   : > { %1165 = vmatmul.mubr.msk.f32.vlgmr.msra.gmra.mrb[6].mxu0 %vm290_vm2, %v805_v19 }
 0x27e   : > { %v361_v20 = vpop.f32.mrb[0].mxu1 }
 0x27f   : > { %v1136_v21 = vpop.f32.mrb[1].mxu1  ;;  %v365_v22 = vsel %vm290_vm2, %v361_v20, -inf }
 0x280   : > { %366 = vmax.xlane.f32.xlu1 %v365_v22 }
 0x282   : > { %v530_v23 = vpop.f32.mrb[2].mxu0 }
 0x283   : > { %v1146_v24 = vpop.f32.mrb[3].mxu0  ;;  %v534_v25 = vsel %vm290_vm2, %v530_v23, -inf }
 0x284   : > { %535 = vmax.xlane.f32.xlu0 %v534_v25 }
 0x286   : > { %v704_v26 = vpop.f32.mrb[4].mxu0 }
 0x287   : > { %v1156_v27 = vpop.f32.mrb[5].mxu0  ;;  %v708_v28 = vsel %vm290_vm2, %v704_v26, -inf }
 0x288   : > { %709 = vmax.xlane.f32.xlu0 %v708_v28 }
 0x28a   : > { %v878_v29 = vpop.f32.mrb[6].mxu0 }
 0x28b   : > { %v1166_v30 = vpop.f32.mrb[7].mxu0  ;;  %v882_v31 = vsel %vm290_vm2, %v878_v29, -inf }
 0x291   : > { %547 = vrot.lane.b32.xlu1 %v284_v11, %s1414_s11 }
 0x29e   : > { %378 = vrot.lane.b32.xlu0 %v284_v11, %s1415_s27 }
 0x2a2   : > { %895 = vrot.lane.b32.xlu0 %v284_v11, %s1416_s28 }
 0x2b5   : > { %883 = vmax.xlane.f32.xlu1 %v882_v31 }
 0x2c6   : > { %721 = vrot.lane.b32.xlu1 %v284_v11, %s1417_s29 }
 0x30d   : > { %v367_v32 = vpop.xlane.xlu1 %366 }
 0x30e   : > { %v368_v33 = vsub.f32 %v361_v20, %v367_v32 }
 0x310   : > { %v369_v34 = vmul.f32 1.442695, %v368_v33 }
 0x311   : > { %v536_v35 = vpop.xlane.xlu0 %535  ;;  %v548_v43 = vpop.permute.xlu1 %547 }
 0x312   : > { %1254 = vpow2.f32 %v369_v34  ;;  %v537_v36 = vsub.f32 %v530_v23, %v536_v35 }
 0x314   : > { %v538_v37 = vmul.f32 1.442695, %v537_v36 }
 0x315   : > { %v710_v38 = vpop.xlane.xlu0 %709 }
 0x316   : > { %1256 = vpow2.f32 %v538_v37  ;;  %v711_v39 = vsub.f32 %v704_v26, %v710_v38 }
 0x318   : > { %v712_v40 = vmul.f32 1.442695, %v711_v39 }
 0x319   : > { %v379_v41 = vpop.permute.xlu0 %378 }
 0x31a   : > { %1258 = vpow2.f32 %v712_v40  ;;  %1138 = vmatpush3.msra.mxu1 %v379_v41 }
 0x31b   : > { %1147 = vmatprep.subr.mxu1 %v1406_v1 }
 0x31c   : > { %v1255_v42 = vpop.eup %1254 }
 0x31d   : > { %1140 = vmatmul.mubr.msk.f32.vlgmr.msra.gmra.mrb[2].mxu1 %vm290_vm2, %v1255_v42  ;;  %v371_v48 = vsel %vm290_vm2, %v1255_v42, 0.0  ;;  %v896_v53 = vpop.permute.xlu0 %895 }
 0x31e   : > { %1148 = vmatpush3.msra.mxu1 %v548_v43  ;;  %1149 = vmatprep.mubr.msk.f32.mxu1 %vm1405_vm0, %v1406_v1 }
 0x31f   : > { %1157 = vmatprep.subr.mxu1 %v1406_v1 }
 0x320   : > { %v1257_v44 = vpop.eup %1256 }
 0x321   : > { %1150 = vmatmul.mubr.msk.f32.vlgmr.msra.gmra.mrb[4].mxu1 %vm290_vm2, %v1257_v44  ;;  %v540_v45 = vsel %vm290_vm2, %v1257_v44, 0.0 }
 0x322   : > { %541 = vadd.xlane.f32.xlu1 %v540_v45  ;;  %1159 = vmatprep.mubr.msk.f32.mxu1 %vm1405_vm0, %v1406_v1 }
 0x324   : > { %v1259_v46 = vpop.eup %1258 }
 0x325   : > { %v714_v47 = vsel %vm290_vm2, %v1259_v46, 0.0 }
 0x326   : > { %715 = vadd.xlane.f32.xlu0 %v714_v47  ;;  %372 = vadd.xlane.f32.xlu1 %v371_v48 }
 0x342   : > { %v884_v49 = vpop.xlane.xlu1 %883 }
 0x343   : > { %v885_v50 = vsub.f32 %v878_v29, %v884_v49 }
 0x345   : > { %v886_v51 = vmul.f32 1.442695, %v885_v50 }
 0x346   : > { %v722_v52 = vpop.permute.xlu1 %721 }
 0x347   : > { %1260 = vpow2.f32 %v886_v51  ;;  %1158 = vmatpush3.msra.mxu1 %v722_v52 }
 0x348   : > { %1160 = vmatmul.mubr.msk.f32.vlgmr.msra.gmra.mrb[6].mxu1 %vm290_vm2, %v1259_v46  ;;  %1167 = vmatprep.subr.mxu1 %v1406_v1 }
 0x349   : > { %1168 = vmatpush3.msra.mxu1 %v896_v53  ;;  %1169 = vmatprep.mubr.msk.f32.mxu1 %vm1405_vm0, %v1406_v1 }
 0x351   : > { %v1261_v54 = vpop.eup %1260 }
 0x352   : > { %1170 = vmatmul.mubr.msk.f32.vlgmr.msra.gmra.mrb[8].mxu1 %vm290_vm2, %v1261_v54  ;;  %v888_v55 = vsel %vm290_vm2, %v1261_v54, 0.0 }
 0x353   : > { %889 = vadd.xlane.f32.xlu0 %v888_v55 }
 0x3af   : > { %v542_v56 = vpop.xlane.xlu1 %541 }
 0x3b3   : > { %v373_v57 = vpop.xlane.xlu1 %372  ;;  %v716_v8 = vpop.xlane.xlu0 %715 }
 0x3b4   : > { %1262 = vrcp.f32 %v373_v57 }
 0x3b5   : > { %1264 = vrcp.f32 %v542_v56 }
 0x3b6   : > { %1266 = vrcp.f32 %v716_v8 }
 0x3be   : > { %v1263_v58 = vpop.eup %1262 }
 0x3bf   : > { %v375_v59 = vmul.f32 %v1263_v58, %v373_v57  ;;  %v1265_v60 = vpop.eup %1264 }
 0x3c0   : > { %v544_v61 = vmul.f32 %v1265_v60, %v542_v56  ;;  %v1267_v10 = vpop.eup %1266 }
 0x3c1   : > { %v376_v62 = vsub.f32 2.0, %v375_v59  ;;  %v718_v11 = vmul.f32 %v1267_v10, %v716_v8 }
 0x3c2   : > { %v545_v63 = vsub.f32 2.0, %v544_v61 }
 0x3c3   : > { %v377_v0 = vmul.f32 %v1263_v58, %v376_v62  ;;  %v719_v12 = vsub.f32 2.0, %v718_v11 }
 0x3c4   : > { %v546_v4 = vmul.f32 %v1265_v60, %v545_v63 }
 0x3c5   : > { %v720_v14 = vmul.f32 %v1267_v10, %v719_v12 }
 0x3e0   : > { %v890_v9 = vpop.xlane.xlu0 %889 }
 0x3e1   : > { %1268 = vrcp.f32 %v890_v9 }
 0x3eb   : > { %v1269_v13 = vpop.eup %1268 }
 0x3ec   : > { %v892_v16 = vmul.f32 %v1269_v13, %v890_v9 }
 0x3ee   : > { %v893_v19 = vsub.f32 2.0, %v892_v16 }
 0x3f0   : > { %v450_v2 = vpop.f32.mrb[2].mxu1  ;;  %v894_v20 = vmul.f32 %v1269_v13, %v893_v19 }
 0x3f1   : > { %v454_v1 = vmul.f32 %v450_v2, %v377_v0  ;;  %v1141_v3 = vpop.f32.mrb[3].mxu1 }
 0x3f3   : > { %455 = vst.msk [vmem:[%s1643_s23] sm:$0xff] %vm290_vm2, %v454_v1 }
 0x3f4   : > { %v619_v5 = vpop.f32.mrb[4].mxu1 }
 0x3f5   : > { %v623_v6 = vmul.f32 %v619_v5, %v546_v4  ;;  %v1151_v7 = vpop.f32.mrb[5].mxu1 }
 0x3f7   : > { %625 = vrot.lane.b32.xlu0 %v623_v6, %s1418_s6 }
 0x41b   : > { %v793_v15 = vpop.f32.mrb[6].mxu1 }
 0x41c   : > { %v797_v17 = vmul.f32 %v793_v15, %v720_v14  ;;  %v1161_v18 = vpop.f32.mrb[7].mxu1 }
 0x41e   : > { %799 = vrot.lane.b32.xlu1 %v797_v17, %s1419_s22 }
 0x425   : > { %v967_v21 = vpop.f32.mrb[8].mxu1 }
 0x426   : > { %v971_v22 = vmul.f32 %v967_v21, %v894_v20  ;;  %v1171_v23 = vpop.f32.mrb[9].mxu1 }
 0x428   : > { %973 = vrot.lane.b32.xlu1 %v971_v22, %s1420_s7 }
 0x469   : > { %v626_v24 = vpop.permute.xlu0 %625 }
 0x46a   : > { %629 = vst.msk [vmem:[%s1643_s23] sm:$0xff] %vm628_vm3, %v626_v24 }
 0x490   : > { %v800_v25 = vpop.permute.xlu1 %799 }
 0x491   : > { %803 = vst.msk [vmem:[%s1643_s23] sm:$0xff] %vm802_vm4, %v800_v25 }
 0x49a   : > { %v974_v26 = vpop.permute.xlu1 %973 }
 0x49b   : > { %977 = vst.msk [vmem:[%s1643_s23] sm:$0xff] %vm976_vm5, %v974_v26 }
 0x49c   : > { %1341 = shalt.err (!%p1338_p7)
}
 0x49d   : > { %s1342_s30 = scalar_lea.hbm %s1654_s26, 128  ;;  %s1346_s28 = scalar_lea.hbm %s1702_s3, 256 }
 0x49e   : > { %p1343_p9 = scmp.ne.s32.totalorder %s1654_s26, %s1342_s30  ;;  %p1347_p0 = scmp.lt.u32.totalorder %s1654_s26, %s1702_s3 }
 0x49f   : > { %p1348_p11 = scmp.lt.u32.totalorder %s1346_s28, %s1342_s30  ;;  %p1350_p4 = scmp.lt.u32.totalorder %s1342_s30, %s1654_s26 }
 0x4a0   : > { %p1344_p2 = pnand %p1343_p9, %p1533_p12 }
 0x4a1   : > { %p1349_p1 = por %p1348_p11, %p1347_p0 }
 0x4a2   : > { %p1345_p5 = pneg %p1344_p2 }
 0x4a3   : > { %p1351_p6 = por %p1350_p4, %p1349_p1 }
 0x4a5   : > { %p1352_p8 = pnand %p1351_p6, %p1345_p5 }
 0x4a7   : > { %1355 = shalt.err (!%p1352_p8)
}
 0x4a8   : > { %1184 = dma.vmem_to_hbm [thread:$0]  (%p1533_p12), %s1656_s20, 128, %s1654_s26, %s979_s5  }
 0x4a9 PF: > { %s1004_s6 = sand.u32 1, %s1386_s12   ;;  %p1717_p10 = scmp.ne.s32.totalorder %s1707_s19, 0 }
 0x4aa   : > { %p1718_p13 = scmp.ge.s32.totalorder %s1398_s15, 2  ;;  %s1005_s22 = scalar_lea.sflag [#allocation4], %s1004_s6 }
 0x4ac   : > { %p1195_p3 = pnand %p1718_p13, %p1717_p10 }
 0x4ae   : > { %1381 = dma.done.wait (!%p1195_p3), %s1005_s22, 128  }
 0x4af   : > { %1383 = vsyncadd (!%p1195_p3), %s1005_s22, 4294967168  ;;  %p17_p7 = scmp.ge.s32.totalorder %s1498_s24, 4   ;;  %s1719_s12 = smov %s1390_s13 }
 0x4b0   : > { %s1720_s13 = smov %s1394_s14  ;;  %s1721_s14 = smov %s1529_s17 }
 0x4b1   : > { %s1722_s15 = smov %s1498_s24  ;;  %19 = sbr.rel (!%p17_p7) target bundleno = 6 (0x6), region = 81 }
 0x4b8   :  { %1010 = vsyncpa [#allocation3], 1 }
 0x4b9   :  { %1012 = vsyncpa [#allocation3 + $0x1], 1 }
 0x4ba   :  { %1013 = vsyncpa [#allocation6], 1 }
 0x4bb   :  { %1014 = vsyncpa [#allocation4], 1 }
 0x4bc   :  { %1016 = vsyncpa [#allocation4 + $0x1], 1 }

</bundles_post_ra>
